<compile_context>
chip_gen: v7x
topology: tpu7x:2x2x1
jax: 0.10.0
libtpu: 0.0.40
codegen_flags: <defaults>
</compile_context>

<pallas_src>
import functools
import math

import jax
import jax.numpy as jnp
from jax.experimental import pallas as pl
from jax.experimental.pallas import tpu as pltpu

VMEM = pltpu.MemorySpace.VMEM


def _vspecs(n):
    return [pl.BlockSpec(memory_space=VMEM) for _ in range(n)]


def _round_up(x, m):
    return (x + m - 1) // m * m


def _chip_defaults():
    """Per-generation (dst-tile preference, scoped-VMEM budget, two_cores)."""
    kind = ""
    try:
        kind = jax.devices()[0].device_kind.lower()
    except Exception:
        pass
    if "v7" in kind or "7x" in kind:
        # v7x: 64 MiB VMEM, 2 TensorCores -> smaller tiles, keep nt >= 2.
        return 128, 48 * 1024 * 1024, True
    # v5e / v6e: 128 MiB VMEM, single TensorCore -> bigger tiles.
    return 512, 64 * 1024 * 1024, False


# ----------------------------------------------------------------------------
# Kernel 1: plain linear  y = x @ W + b
#   (used for the fused block-diagonal input projection with a per-row bias,
#    and for the final 1-layer MLP with a broadcast bias)
# ----------------------------------------------------------------------------
def linear_kernel(x_ref, w_ref, b_ref, o_ref):
    o_ref[...] = (
        jnp.dot(x_ref[...], w_ref[...], preferred_element_type=jnp.float32)
        + b_ref[...])


def linear(x, w, b, vmem_limit):
    # TODO(synk): row-tile this for very large graphs; untiled is fine here.
    m, fout = x.shape[0], w.shape[1]
    return pl.pallas_call(
        linear_kernel,
        out_shape=jax.ShapeDtypeStruct((m, fout), jnp.float32),
        in_specs=_vspecs(3),
        out_specs=pl.BlockSpec(memory_space=VMEM),
        compiler_params=pltpu.CompilerParams(vmem_limit_bytes=vmem_limit),
    )(x, w, b)


# ----------------------------------------------------------------------------
# Kernel 2: per-layer q/k/v/skip projections, computed ONCE per layer
#   q/k/v are emitted head-major (heads, N, C); q is pre-scaled by 1/sqrt(C).
# ----------------------------------------------------------------------------
def qkvs_kernel(x_ref, wq_ref, bq_ref, wk_ref, bk_ref, wv_ref, bv_ref,
                ws_ref, bs_ref, q_ref, k_ref, v_ref, skip_ref,
                *, heads, out_ch, scale):
    x = x_ref[...]
    q = (jnp.dot(x, wq_ref[...], preferred_element_type=jnp.float32)
         + bq_ref[...]) * scale
    k = jnp.dot(x, wk_ref[...], preferred_element_type=jnp.float32) + bk_ref[...]
    v = jnp.dot(x, wv_ref[...], preferred_element_type=jnp.float32) + bv_ref[...]
    skip_ref[...] = (
        jnp.dot(x, ws_ref[...], preferred_element_type=jnp.float32) + bs_ref[...])
    # Head split done once per layer (amortized over all dst tiles).
    for h in range(heads):
        sl = slice(h * out_ch, (h + 1) * out_ch)
        q_ref[h] = q[:, sl]
        k_ref[h] = k[:, sl]
        v_ref[h] = v[:, sl]


def qkvs_proj(x, p, heads, out_ch, vmem_limit):
    n_pad = x.shape[0]
    hc = heads * out_ch
    return pl.pallas_call(
        functools.partial(qkvs_kernel, heads=heads, out_ch=out_ch,
                          scale=1.0 / math.sqrt(out_ch)),
        out_shape=(jax.ShapeDtypeStruct((heads, n_pad, out_ch), jnp.float32),
                   jax.ShapeDtypeStruct((heads, n_pad, out_ch), jnp.float32),
                   jax.ShapeDtypeStruct((heads, n_pad, out_ch), jnp.float32),
                   jax.ShapeDtypeStruct((n_pad, hc), jnp.float32)),
        in_specs=_vspecs(9),
        out_specs=tuple(_vspecs(4)),
        compiler_params=pltpu.CompilerParams(vmem_limit_bytes=vmem_limit),
    )(x, p["wq"], p["bq"], p["wk"], p["bk"], p["wv"], p["bv"], p["ws"], p["bs"])


# ----------------------------------------------------------------------------
# Kernel 3: fused attention layer, tiled over dst-row blocks
#   TransformerConv (PyG semantics, edge_dim=1, concat=True, root_weight=True,
#   beta=False, attention dropout = 0 in eval) + LayerNorm + ReLU epilogue
#   + running head-averaged attention accumulation ([dst, src] orientation,
#   aliased in place).  "No edge" is NaN in adj_ref.
# ----------------------------------------------------------------------------
def attn_layer_kernel(q_ref, k_ref, v_ref, we_ref, skip_ref, lnw_ref, lnb_ref,
                      adj_ref, att_in_ref, out_ref, att_out_ref, *, heads):
    adj_raw = adj_ref[...]                       # (T, N)  NaN == no edge
    valid = adj_raw == adj_raw                   # NaN self-compare -> mask
    adj = jnp.where(valid, adj_raw, 0.0)
    neg = jnp.float32(-1e30)

    att_acc = jnp.zeros_like(adj)
    outs = []
    for h in range(heads):                       # static, small
        qh = q_ref[h]                            # (T, C) pre-scaled
        kh = k_ref[h]                            # (N, C)
        vh = v_ref[h]                            # (N, C)
        weh = we_ref[h]                          # (1, C)
        # logits_ij = q_i.(k_j + adj_ij*we) = q_i.k_j + adj_ij*(q_i.we)
        qk = jnp.dot(qh, kh.T, preferred_element_type=jnp.float32)   # (T, N) MXU
        qe = jnp.sum(qh * weh, axis=-1, keepdims=True)               # (T, 1) VPU
        logits = jnp.where(valid, qk + adj * qe, neg)
        row_max = jnp.max(logits, axis=-1, keepdims=True)
        # second select protects fully-masked rows (padded dst rows)
        ex = jnp.where(valid, jnp.exp(logits - row_max), 0.0)
        denom = jnp.sum(ex, axis=-1, keepdims=True)
        alpha = ex * (1.0 / jnp.where(denom > 0.0, denom, 1.0))      # exact div
        # out_i = sum_j alpha_ij * (v_j + adj_ij*we)
        out_h = jnp.dot(alpha, vh, preferred_element_type=jnp.float32)
        out_h = out_h + jnp.sum(alpha * adj, axis=-1, keepdims=True) * weh
        outs.append(out_h)
        att_acc = att_acc + alpha

    # Local concat + skip, then fused LayerNorm (eps=1e-5) -> ReLU epilogue;
    # one lane-dense (T, HC) store, no read-back.
    y = jnp.concatenate(outs, axis=-1) + skip_ref[...]
    mean = jnp.mean(y, axis=-1, keepdims=True)
    var = jnp.mean(jnp.square(y - mean), axis=-1, keepdims=True)
    y = (y - mean) * jax.lax.rsqrt(var + 1e-5) * lnw_ref[...] + lnb_ref[...]
    out_ref[...] = jnp.maximum(y, 0.0)

    # Cross-layer attention accumulation (in place, [dst, src]).
    att_out_ref[...] = att_in_ref[...] + att_acc * (1.0 / heads)


def attention_layer(q, k, v, we_hm, skip, ln_w, ln_b, adj_pad, att_prev,
                    heads, dst_tile, vmem_limit):
    _, n_pad, c = q.shape
    hc = heads * c
    t = dst_tile
    nt = n_pad // t
    out, att = pl.pallas_call(
        functools.partial(attn_layer_kernel, heads=heads),
        grid=(nt,),
        out_shape=(jax.ShapeDtypeStruct((n_pad, hc), jnp.float32),
                   jax.ShapeDtypeStruct((n_pad, n_pad), jnp.float32)),
        in_specs=[
            pl.BlockSpec((heads, t, c), lambda i: (0, i, 0)),      # q dst tile
            pl.BlockSpec((heads, n_pad, c), lambda i: (0, 0, 0)),  # k (resident)
            pl.BlockSpec((heads, n_pad, c), lambda i: (0, 0, 0)),  # v (resident)
            pl.BlockSpec((heads, 1, c), lambda i: (0, 0, 0)),      # lin_edge w
            pl.BlockSpec((t, hc), lambda i: (i, 0)),               # skip tile
            pl.BlockSpec((1, hc), lambda i: (0, 0)),               # LayerNorm w
            pl.BlockSpec((1, hc), lambda i: (0, 0)),               # LayerNorm b
            pl.BlockSpec((t, n_pad), lambda i: (i, 0)),            # adj [dst,src]
            pl.BlockSpec((t, n_pad), lambda i: (i, 0)),            # running att in
        ],
        out_specs=(pl.BlockSpec((t, hc), lambda i: (i, 0)),
                   pl.BlockSpec((t, n_pad), lambda i: (i, 0))),
        input_output_aliases={8: 1},                               # att in-place
        compiler_params=pltpu.CompilerParams(
            dimension_semantics=("parallel",),
            vmem_limit_bytes=vmem_limit),
    )(q, k, v, we_hm, skip, ln_w, ln_b, adj_pad, att_prev)
    return out, att


# ----------------------------------------------------------------------------
# Full drGT forward
# ----------------------------------------------------------------------------
def drgt_forward(params, drug, cell, gene, adj_enc, idx_drug, idx_cell,
                 heads, n_layers):
    n_drug, n_cell, n_gene = drug.shape[0], cell.shape[0], gene.shape[0]
    n = n_drug + n_cell + n_gene
    hidden1 = params["w_drug"].shape[1]

    dst_pref, vmem_limit, two_cores = _chip_defaults()
    t = min(dst_pref, _round_up(n, 8))
    if two_cores and n > 8:
        t = min(t, _round_up(pl.cdiv(n, 2), 8))   # keep nt >= 2 for 2 TensorCores
    n_pad = _round_up(n, t)                       # ragged graphs: pad dst rows

    # --- fused block-diagonal input projection (one matmul, one dense store) ---
    f_d, f_c, f_g = drug.shape[1], cell.shape[1], gene.shape[1]
    f_in = f_d + f_c + f_g
    x_big = jnp.zeros((n_pad, f_in), jnp.float32)
    x_big = x_big.at[:n_drug, :f_d].set(drug)
    x_big = x_big.at[n_drug:n_drug + n_cell, f_d:f_d + f_c].set(cell)
    x_big = x_big.at[n_drug + n_cell:n, f_d + f_c:].set(gene)
    w_big = jnp.concatenate(
        [params["w_drug"], params["w_cell"], params["w_gene"]], axis=0)
    b_rows = jnp.concatenate(
        [jnp.broadcast_to(params["b_drug"], (n_drug, hidden1)),
         jnp.broadcast_to(params["b_cell"], (n_cell, hidden1)),
         jnp.broadcast_to(params["b_gene"], (n_gene, hidden1)),
         jnp.zeros((n_pad - n, hidden1), jnp.float32)], axis=0)
    x = linear(x_big, w_big, b_rows, vmem_limit)

    # --- pad the NaN-encoded dense edge-attr matrix (padding = no edges) ---
    adj_pad = jnp.full((n_pad, n_pad), jnp.nan, jnp.float32)
    adj_pad = adj_pad.at[:n, :n].set(adj_enc)
    all_att = jnp.zeros((n_pad, n_pad), jnp.float32)   # running attention [dst,src]

    for i in range(n_layers):
        lp = params["layers"][i]
        q, k, v, skip = qkvs_proj(x, lp, heads, lp["out_ch"], vmem_limit)
        x, all_att = attention_layer(q, k, v, lp["we_hm"], skip,
                                     lp["ln_w"], lp["ln_b"], adj_pad, all_att,
                                     heads, t, vmem_limit)

    # glue: dynamic row gather + concat outside the kernels
    pair = jnp.concatenate([x[idx_drug], x[idx_cell]], axis=1)
    out = linear(pair, params["w_final"], params["b_final"], vmem_limit)
    # get_attention_mat convention graph[src, dst]: single transpose at the end
    return out, all_att[:n, :n].T


# ----------------------------------------------------------------------------
if __name__ == "__main__":
    key = jax.random.PRNGKey(0)
    keys = jax.random.split(key, 10)

    # module config (small, consistent with drGT)
    n_drug, n_cell, n_gene = 4, 4, 8
    hidden1, hidden2, hidden3, heads = 32, 16, 16, 2
    n_layers = 2
    N = n_drug + n_cell + n_gene  # total graph nodes

    # inputs: similarity-style square feature matrices
    drug = jax.random.normal(keys[0], (n_drug, n_drug), jnp.float32)
    cell = jax.random.normal(keys[1], (n_cell, n_cell), jnp.float32)
    gene = jax.random.normal(keys[2], (n_gene, n_gene), jnp.float32)

    # graph: self-loops + ring (all edges unique, edge.max()+1 == N)
    src = jnp.concatenate([jnp.arange(N), jnp.arange(N)]).astype(jnp.int32)
    dst = jnp.concatenate([jnp.arange(N), (jnp.arange(N) + 1) % N]).astype(jnp.int32)
    edge_attr = jax.random.uniform(keys[3], (src.shape[0],), jnp.float32)
    # dense [dst, src] edge-attr matrix with NaN == "no edge" (glue, not a kernel)
    adj_enc = jnp.full((N, N), jnp.nan, jnp.float32).at[dst, src].set(edge_attr)

    idx_drug = jnp.array([0, 1, 2, 3, 0, 1, 2, 3], dtype=jnp.int32)
    idx_cell = jnp.array([4, 5, 6, 7, 5, 6, 7, 4], dtype=jnp.int32)

    # deterministic parameter init (synthetic; no checkpoint loading)
    def init_lin(k, fin, fout):
        kw, kb = jax.random.split(k)
        w = jax.random.normal(kw, (fin, fout), jnp.float32) / math.sqrt(fin)
        b = jax.random.normal(kb, (1, fout), jnp.float32) * 0.01
        return w, b

    pkeys = jax.random.split(keys[4], 4 + n_layers)
    params = {}
    params["w_drug"], params["b_drug"] = init_lin(pkeys[0], n_drug, hidden1)
    params["w_cell"], params["b_cell"] = init_lin(pkeys[1], n_cell, hidden1)
    params["w_gene"], params["b_gene"] = init_lin(pkeys[2], n_gene, hidden1)

    in_ch = [hidden1] + [hidden2 * heads] * (n_layers - 1)
    out_ch = [hidden2] * (n_layers - 1) + [hidden3]
    layers = []
    for i in range(n_layers):
        lk = jax.random.split(pkeys[4 + i], 5)
        hc = heads * out_ch[i]
        wq, bq = init_lin(lk[0], in_ch[i], hc)
        wk, bk = init_lin(lk[1], in_ch[i], hc)
        wv, bv = init_lin(lk[2], in_ch[i], hc)
        we = jax.random.normal(lk[3], (1, hc), jnp.float32)   # lin_edge, bias=False
        ws, bs = init_lin(lk[4], in_ch[i], hc)                # lin_skip (root weight)
        layers.append(dict(
            wq=wq, bq=bq, wk=wk, bk=bk, wv=wv, bv=bv,
            we_hm=we.reshape(heads, 1, out_ch[i]),            # head-major lin_edge
            ws=ws, bs=bs,
            ln_w=jnp.ones((1, hc), jnp.float32),              # LayerNorm default init
            ln_b=jnp.zeros((1, hc), jnp.float32),
            out_ch=out_ch[i]))
    params["layers"] = layers
    params["w_final"], params["b_final"] = init_lin(pkeys[3], 2 * hidden3 * heads, 1)

    out, all_attention = drgt_forward(
        params, drug, cell, gene, adj_enc, idx_drug, idx_cell, heads, n_layers)
    jax.block_until_ready((out, all_attention))

    assert out.shape == (idx_drug.shape[0], 1)
    assert all_attention.shape == (N, N)
    print("KERNEL_OK")
</pallas_src>

<mosaic_0001>
module attributes {stable_mosaic.version = 11 : i64} {
  func.func @linear_kernel(%arg0: memref<16x16xf32, #tpu.memory_space<vmem>>, %arg1: memref<16x32xf32, #tpu.memory_space<vmem>>, %arg2: memref<16x32xf32, #tpu.memory_space<vmem>>, %arg3: memref<16x32xf32, #tpu.memory_space<vmem>>) attributes {dimension_semantics = [], scalar_prefetch = 0 : i64, scratch_operands = 0 : i64, tpu.core_type = #tpu.core_type<tc>} {
    %c0 = arith.constant 0 : index
    %c0_0 = arith.constant 0 : index
    %0 = vector.load %arg0[%c0, %c0_0] : memref<16x16xf32, #tpu.memory_space<vmem>>, vector<16x16xf32>
    %c0_1 = arith.constant 0 : index
    %c0_2 = arith.constant 0 : index
    %1 = vector.load %arg1[%c0_1, %c0_2] : memref<16x32xf32, #tpu.memory_space<vmem>>, vector<16x32xf32>
    %cst = arith.constant dense<0.000000e+00> : vector<16x32xf32>
    %2 = tpu.matmul %0, %1, %cst {dimension_numbers = #tpu.dot_dimension_numbers<[1], [0], [0], [1], [0, 0, 1, 1], [], []>} : vector<16x16xf32>, vector<16x32xf32>, vector<16x32xf32> -> vector<16x32xf32>
    %c0_3 = arith.constant 0 : index
    %c0_4 = arith.constant 0 : index
    %3 = vector.load %arg2[%c0_3, %c0_4] : memref<16x32xf32, #tpu.memory_space<vmem>>, vector<16x32xf32>
    %4 = arith.addf %2, %3 : vector<16x32xf32>
    %c0_5 = arith.constant 0 : index
    %c0_6 = arith.constant 0 : index
    %5 = vector.load %arg3[%c0_5, %c0_6] : memref<16x32xf32, #tpu.memory_space<vmem>>, vector<16x32xf32>
    tpu.vector_store %arg3[%c0_5, %c0_6], %4 {strides = array<i32>} : memref<16x32xf32, #tpu.memory_space<vmem>>, vector<16x32xf32>,
    return
  }
}

</mosaic_0001>

<bundles_post_ra>
// kernel: tpu_custom_call.1
= control target key start
LH: loop header
LB: loop body
LE: loop exit
PB: predicated region body
PF: predicated region fallthrough
CT: control target
= control target key end

     0   :  { %8 = vsyncpa [#allocation3], 0  ;;  %s375_s0 = inlined_call_operand.hbm [shape: f32[16,16], index: 0, kind: input, shape index: {}]   ;;  %s376_s1 = inlined_call_operand.hbm [shape: f32[16,32], index: 1, kind: input, shape index: {}]   ;;  %s377_s2 = inlined_call_operand.hbm [shape: f32[16,32], index: 2, kind: input, shape index: {}]   ;;  %s378_s3 = inlined_call_operand.hbm [shape: f32[16,32], index: 3, kind: output, shape index: {}]  }
   0x1   :  { %9 = vsyncpa [#allocation6], 0 }
   0x2   :  { %10 = vsyncpa [#allocation4], 0  ;;  %s282_s12 = smov [#allocation5]   ;;  %s283_s14 = smov [#allocation2]  }
   0x3   :  { %s28_s13 = sshll.u32 %s282_s12, 4  ;;  %s16_s15 = sshll.u32 %s283_s14, 4  ;;  %s29_s13 = int_to_ptr.vmem [resolvable:$true] %s28_s13  ;;  %s308_s15 = int_to_ptr.vmem [resolvable:$true] %s16_s15 }
   0x4   :  { %s188_s18 = scalar_lea.hbm %s376_s1, 256 }
   0x5   :  { %p189_p0 = scmp.ne.s32.totalorder %s376_s1, %s188_s18  ;;  %p192_p1 = scmp.lt.u32.totalorder %s188_s18, %s376_s1 }
   0x7   :  { %p194_p2 = pnand %p192_p1, %p189_p0 }
   0x9   :  { %197 = shalt.err (!%p194_p2)
}
   0xa   :  { %s198_s23 = scalar_lea.vmem %s29_s13, 256  ;;  %p203_p4 = scmp.lt.s32.totalorder %s29_s13, %s29_s13 }
   0xb   :  { %p199_p3 = scmp.ne.s32.totalorder %s29_s13, %s198_s23  ;;  %p204_p5 = scmp.lt.s32.totalorder %s198_s23, %s198_s23 }
   0xd   :  { %p205_p6 = por %p204_p5, %p203_p4 }
   0xf   :  { %p206_p7 = pnand %p205_p6, %p199_p3 }
  0x11   :  { %209 = shalt.err (!%p206_p7)
}
  0x12   :  { %s284_s24 = smov 128   ;;  %s285_s25 = smov 8  }
  0x13   :  { %34 = dma.hbm_to_vmem [thread:$0]  %s376_s1, 256, %s29_s13, [#allocation6], %s284_s24, %s284_s24, %s285_s25  }
  0x14   :  { %s210_s30 = scalar_lea.hbm %s375_s0, 256 }
  0x15   :  { %p211_p8 = scmp.ne.s32.totalorder %s375_s0, %s210_s30  ;;  %p214_p9 = scmp.lt.u32.totalorder %s210_s30, %s375_s0 }
  0x17   :  { %p216_p10 = pnand %p214_p9, %p211_p8 }
  0x19   :  { %219 = shalt.err (!%p216_p10)
}
  0x1a   :  { %s220_s8 = scalar_lea.vmem %s308_s15, 256  ;;  %p225_p12 = scmp.lt.s32.totalorder %s308_s15, %s308_s15 }
  0x1b   :  { %p221_p11 = scmp.ne.s32.totalorder %s308_s15, %s220_s8  ;;  %p226_p13 = scmp.lt.s32.totalorder %s220_s8, %s220_s8 }
  0x1d   :  { %p227_p0 = por %p226_p13, %p225_p12 }
  0x1f   :  { %p228_p1 = pnand %p227_p0, %p221_p11 }
  0x21   :  { %231 = shalt.err (!%p228_p1)
}
  0x22   :  { %22 = dma.hbm_to_vmem [thread:$0]  %s375_s0, 256, %s308_s15, [#allocation3], %s284_s24, %s284_s24, %s285_s25  }
  0x23   :  { %s286_s10 = smov [#allocation7]   ;;  %s232_s14 = scalar_lea.hbm %s377_s2, 256 }
  0x24   :  { %s40_s11 = sshll.u32 %s286_s10, 4  ;;  %p233_p2 = scmp.ne.s32.totalorder %s377_s2, %s232_s14  ;;  %s41_s11 = int_to_ptr.vmem [resolvable:$true] %s40_s11 }
  0x25   :  { %p236_p3 = scmp.lt.u32.totalorder %s232_s14, %s377_s2 }
  0x27   :  { %p238_p4 = pnand %p236_p3, %p233_p2 }
  0x29   :  { %241 = shalt.err (!%p238_p4)
}
  0x2a   :  { %s242_s20 = scalar_lea.vmem %s41_s11, 256  ;;  %p247_p6 = scmp.lt.s32.totalorder %s41_s11, %s41_s11 }
  0x2b   :  { %p243_p5 = scmp.ne.s32.totalorder %s41_s11, %s242_s20  ;;  %p248_p7 = scmp.lt.s32.totalorder %s242_s20, %s242_s20 }
  0x2d   :  { %p249_p8 = por %p248_p7, %p247_p6 }
  0x2f   :  { %p250_p9 = pnand %p249_p8, %p243_p5 }
  0x31   :  { %253 = shalt.err (!%p250_p9)
}
  0x32   :  { %46 = dma.hbm_to_vmem [thread:$0]  %s377_s2, 256, %s41_s11, [#allocation6], %s284_s24, %s284_s24, %s285_s25  }
  0x33   :  { %276 = dma.done.wait [#allocation3], 256  }
  0x34   :  { %277 = vsyncadd [#allocation3], 4294967040 }
  0x35   :  { %278 = dma.done.wait [#allocation6], 512  }
  0x36   :  { %279 = vsyncadd [#allocation6], 4294966784  ;;  %vm62_vm0 = vcmask 130048   ;;  %v58_v0 = vld [vmem:[#allocation5] sm:$0xff]  ;;  %v59_v1 = vld [vmem:[#allocation5 + $0x8] sm:$0xff]  ;;  %s287_s21 = smov [#allocation8]  }
  0x37   :  { %v56_v2 = vld [vmem:[#allocation2] sm:$0xff]  ;;  %v178_v3 = vpack.c.bf16 %v59_v1, %v58_v0  ;;  %v57_v4 = vld [vmem:[#allocation2 + $0x8] sm:$0xff]  ;;  %s152_s22 = sshll.u32 %s287_s21, 4  ;;  %vm144_vm1 = vcmask 261120   ;;  %s153_s22 = int_to_ptr.vmem [resolvable:$true] %s152_s22 }
  0x38   :  { %175 = vmatprep.mubr.msk.f32.mxu0 %vm62_vm0, %v56_v2  ;;  %v61_v5 = vld [vmem:[#allocation7 + $0x8] sm:$0xff]  ;;  %v60_v6 = vld [vmem:[#allocation7] sm:$0xff]  ;;  %s254_s2 = scalar_lea.vmem %s153_s22, 256  ;;  %p259_p11 = scmp.lt.s32.totalorder %s153_s22, %s153_s22 }
  0x39   :  { %179 = vmatprep.subr.bf16.mxu0 %v178_v3  ;;  %p255_p10 = scmp.ne.s32.totalorder %s153_s22, %s254_s2  ;;  %p260_p12 = scmp.lt.s32.totalorder %s254_s2, %s254_s2 }
  0x3a   :  { %181 = vmatpush3.bf16.msra.mxu0 %v178_v3 }
  0x3b   :  { %p261_p13 = por %p260_p12, %p259_p11 }
  0x3d   :  { %176 = vmatmul.mubr.msk.f32.vlgmr.msra.gmra.mrb[0].mxu0 %vm62_vm0, %v57_v4  ;;  %p262_p0 = pnand %p261_p13, %p255_p10 }
 0x110   :  { %v177_v7 = vpop.f32.mrb[0].mxu0 }
 0x111   :  { %v141_v8 = vadd.f32 %v177_v7, %v61_v5  ;;  %v135_v9 = vpop.f32.mrb[1].mxu0 }
 0x112   :  { %v136_v10 = vadd.f32 %v135_v9, %v60_v6 }
 0x113   :  { %146 = vst.msk [vmem:[#allocation8 + $0x8] sm:$0xff] %vm144_vm1, %v141_v8 }
 0x114   :  { %145 = vst.msk [vmem:[#allocation8] sm:$0xff] %vm144_vm1, %v136_v10 }
 0x115   :  { %265 = shalt.err (!%p262_p0)
}
 0x116   :  { %s266_s27 = scalar_lea.hbm %s378_s3, 256 }
 0x117   :  { %p267_p1 = scmp.ne.s32.totalorder %s378_s3, %s266_s27  ;;  %p270_p2 = scmp.lt.u32.totalorder %s266_s27, %s378_s3 }
 0x119   :  { %p272_p3 = pnand %p270_p2, %p267_p1 }
 0x11b   :  { %275 = shalt.err (!%p272_p3)
}
 0x11c   :  { %158 = dma.vmem_to_hbm [thread:$0]  %s153_s22, 256, %s378_s3, [#allocation4], %s284_s24, %s284_s24, %s285_s25  }
 0x11d   :  { %280 = dma.done.wait [#allocation4], 256  }
 0x11e   :  { %281 = vsyncadd [#allocation4], 4294967040 }
 0x11f   :  { %162 = vsyncpa [#allocation3], 1 }
 0x120   :  { %163 = vsyncpa [#allocation6], 1 }
 0x121   :  { %164 = vsyncpa [#allocation4], 1 }

</bundles_post_ra>
